<compile_context>
chip_gen: v7x
topology: tpu7x:2x2x1
jax: 0.10.0
libtpu: 0.0.40
codegen_flags: <defaults>
</compile_context>

<pallas_src>
import jax
import jax.numpy as jnp
from jax.experimental import pallas as pl
from jax.experimental.pallas import tpu as pltpu

HID1 = 256   # first hidden width
HID2 = 128   # feature width


def _mlp_kernel(x_ref, w1_ref, b1_ref, w2_ref, b2_ref, w3_ref, b3_ref,
                logp_ref, feat_ref):
    """One batch tile of the full MLP forward; weights are VMEM-resident."""
    # In-kernel f32 -> bf16 cast (x arrives as f32; this avoids a separate
    # wrapper-side XLA cast pass over the whole batch).
    x = x_ref[...].astype(jnp.bfloat16)                          # [TB, D]

    # Linear(D, 256) + ReLU   (bf16 MXU matmul, f32 accumulate; f32 VPU math)
    h1 = jnp.dot(x, w1_ref[...], preferred_element_type=jnp.float32) + b1_ref[...]
    h1 = jnp.maximum(h1, 0.0)

    # Linear(256, 128) -> features (second module output)
    feats = jnp.dot(h1.astype(jnp.bfloat16), w2_ref[...],
                    preferred_element_type=jnp.float32) + b2_ref[...]
    feat_ref[...] = feats.astype(feat_ref.dtype)

    # classifier: ReLU -> Linear(128, c_pad).
    # Padding lanes carry zero weight columns and a -1e30 bias, so the class
    # mask is free via the bias add (no iota / where needed).
    h2 = jnp.maximum(feats, 0.0)
    logits = jnp.dot(h2.astype(jnp.bfloat16), w3_ref[...],
                     preferred_element_type=jnp.float32) + b3_ref[...]

    # numerically stable log_softmax over dim=1 (all f32)
    m = jnp.max(logits, axis=1, keepdims=True)
    shifted = logits - m
    lse = jnp.log(jnp.sum(jnp.exp(shifted), axis=1, keepdims=True))
    logp_ref[...] = (shifted - lse).astype(logp_ref.dtype)


def _round_up(x, m):
    return (x + m - 1) // m * m


def baseline_mlp_forward(x_flat, params, num_classes, *, tb=512,
                         out_dtype=jnp.float32):
    """x_flat: [B, input_size] f32.  Returns (log_probs [B, C], features [B, 128])."""
    w1, b1, w2, b2, w3, b3 = params
    B, D = x_flat.shape
    c_pad = w3.shape[1]                       # padded class lanes (multiple of 128)
    assert c_pad % 128 == 0 and num_classes <= c_pad

    # Batch tile: multiple of 8 sublanes, capped so that
    #   * the grid has >= 2 tiles whenever B > 8 (keeps both v7x TCs busy),
    #   * the f32 x tile stays <= ~6 MiB (fits default scoped VMEM everywhere).
    tb_eff = min(tb, _round_up(pl.cdiv(B, 2), 8))
    vmem_cap_rows = max(8, (6 * 1024 * 1024 // (D * 4)) // 8 * 8)
    tb_eff = max(8, min(tb_eff, vmem_cap_rows))
    grid = (pl.cdiv(B, tb_eff),)              # last block may be partial (masked)

    const = lambda i: (0, 0)                  # weights/biases: DMA'd once

    logp_pad, feats = pl.pallas_call(
        _mlp_kernel,
        grid=grid,
        in_specs=[
            pl.BlockSpec((tb_eff, D), lambda i: (i, 0)),        # x (f32) batch tile
            pl.BlockSpec((D, HID1), const),                     # w1 (bf16)
            pl.BlockSpec((1, HID1), const),                     # b1 (f32)
            pl.BlockSpec((HID1, HID2), const),                  # w2 (bf16)
            pl.BlockSpec((1, HID2), const),                     # b2 (f32)
            pl.BlockSpec((HID2, c_pad), const),                 # w3 (bf16, class-padded)
            pl.BlockSpec((1, c_pad), const),                    # b3 (f32, -1e30 padding)
        ],
        out_specs=(
            pl.BlockSpec((tb_eff, c_pad), lambda i: (i, 0)),    # log-probs tile
            pl.BlockSpec((tb_eff, HID2), lambda i: (i, 0)),     # features tile
        ),
        out_shape=(
            jax.ShapeDtypeStruct((B, c_pad), out_dtype),
            jax.ShapeDtypeStruct((B, HID2), out_dtype),
        ),
        compiler_params=pltpu.CompilerParams(
            dimension_semantics=("parallel",)),
    )(x_flat, w1, b1, w2, b2, w3, b3)

    # Only the lane-padding slice remains; the batch dim is exact (no row
    # slice).  Consumers that can work on the 128-lane-padded logits may skip
    # this slice entirely.
    return logp_pad[:, :num_classes], feats


def init_params(key, input_size, num_classes, c_pad):
    """PyTorch-style uniform(-1/sqrt(fan_in), 1/sqrt(fan_in)) init.

    Weights are stored in bf16 (MXU operand dtype, cast once here, not per
    call); biases stay f32.  num_classes <= c_pad, c_pad multiple of 128.
    """
    assert c_pad % 128 == 0 and num_classes <= c_pad

    def linear(k, fan_in, fan_out):
        kw, kb = jax.random.split(k)
        bound = 1.0 / jnp.sqrt(fan_in)
        w = jax.random.uniform(kw, (fan_in, fan_out), jnp.float32, -bound, bound)
        b = jax.random.uniform(kb, (1, fan_out), jnp.float32, -bound, bound)
        return w, b

    k1, k2, k3 = jax.random.split(key, 3)
    w1, b1 = linear(k1, input_size, HID1)
    w2, b2 = linear(k2, HID1, HID2)
    w3, b3 = linear(k3, HID2, num_classes)

    # pad class dim to c_pad lanes: zero weight columns, -1e30 bias on the
    # padding lanes (finite large-negative, so no inf-inf in log-softmax).
    w3p = jnp.zeros((HID2, c_pad), jnp.float32).at[:, :num_classes].set(w3)
    b3p = jnp.full((1, c_pad), -1e30, jnp.float32).at[:, :num_classes].set(b3)
    return (w1.astype(jnp.bfloat16), b1,
            w2.astype(jnp.bfloat16), b2,
            w3p.astype(jnp.bfloat16), b3p)


def reference_forward(x_flat, params, num_classes):
    """Pure-JAX reference on the same bf16-matmul / f32-accumulate path."""
    w1, b1, w2, b2, w3, b3 = params
    xb = x_flat.astype(jnp.bfloat16)
    h1 = jnp.maximum(
        jnp.dot(xb, w1, preferred_element_type=jnp.float32) + b1, 0.0)
    feats = jnp.dot(h1.astype(jnp.bfloat16), w2,
                    preferred_element_type=jnp.float32) + b2
    h2 = jnp.maximum(feats, 0.0)
    logits = jnp.dot(h2.astype(jnp.bfloat16), w3,
                     preferred_element_type=jnp.float32) + b3
    logits = logits[:, :num_classes]
    return jax.nn.log_softmax(logits, axis=1), feats


if __name__ == "__main__":
    # Small shapes consistent with the module: NCHW images [B, 3, 16, 16]
    # flattened row-major (nn.Flatten equivalent) -> input_size = 768.
    B, C, H, W = 2, 3, 16, 16
    input_size = C * H * W
    num_classes = 7
    c_pad = 128  # lane-dense padded class dim

    key = jax.random.PRNGKey(0)
    kx, kp = jax.random.split(key)
    x = jax.random.normal(kx, (B, C, H, W), jnp.float32)    # NCHW, like PyTorch
    x_flat = x.reshape(B, -1)

    params = init_params(kp, input_size, num_classes, c_pad)

    # --- demo batch (B=2) ---
    log_probs, features = baseline_mlp_forward(x_flat, params, num_classes)
    jax.block_until_ready((log_probs, features))

    assert log_probs.shape == (B, num_classes)
    assert features.shape == (B, HID2)
    prob_sums = jnp.sum(jnp.exp(log_probs), axis=1)
    assert bool(jnp.all(jnp.abs(prob_sums - 1.0) < 1e-4))

    # cross-check against the pure-JAX reference (same precision path)
    ref_lp, ref_ft = reference_forward(x_flat, params, num_classes)
    assert bool(jnp.all(jnp.abs(log_probs - ref_lp) < 1e-2))
    assert bool(jnp.all(jnp.abs(features - ref_ft) < 1e-2))

    # --- larger ragged batch: exercises the 2-tile grid (v7x both TCs) and
    #     the masked partial last block (no jnp.pad copy, no dead-row work) ---
    B2 = 300
    x2 = jax.random.normal(jax.random.PRNGKey(1), (B2, input_size), jnp.float32)
    lp2, ft2 = baseline_mlp_forward(x2, params, num_classes, tb=512)
    jax.block_until_ready((lp2, ft2))
    assert lp2.shape == (B2, num_classes) and ft2.shape == (B2, HID2)
    assert bool(jnp.all(jnp.abs(jnp.sum(jnp.exp(lp2), axis=1) - 1.0) < 1e-4))
    ref_lp2, ref_ft2 = reference_forward(x2, params, num_classes)
    assert bool(jnp.all(jnp.abs(lp2 - ref_lp2) < 1e-2))
    assert bool(jnp.all(jnp.abs(ft2 - ref_ft2) < 1e-2))

    print("KERNEL_OK")
</pallas_src>

<mosaic_0001>
module attributes {stable_mosaic.version = 11 : i64} {
  func.func @_mlp_kernel(%arg0: i32, %arg1: memref<8x768xf32, #tpu.memory_space<vmem>>, %arg2: memref<768x256xbf16, #tpu.memory_space<vmem>>, %arg3: memref<1x256xf32, #tpu.memory_space<vmem>>, %arg4: memref<256x128xbf16, #tpu.memory_space<vmem>>, %arg5: memref<1x128xf32, #tpu.memory_space<vmem>>, %arg6: memref<128x128xbf16, #tpu.memory_space<vmem>>, %arg7: memref<1x128xf32, #tpu.memory_space<vmem>>, %arg8: memref<8x128xf32, #tpu.memory_space<vmem>>, %arg9: memref<8x128xf32, #tpu.memory_space<vmem>>) attributes {dimension_semantics = [#tpu.dimension_semantics<parallel>], iteration_bounds = array<i64: 1>, scalar_prefetch = 0 : i64, scratch_operands = 0 : i64, tpu.core_type = #tpu.core_type<tc>, window_params = [{transform_indices = @transform_0, window_bounds = array<i64: 8, 768>}, {pipeline_mode = #tpu.pipeline_mode<synchronous>, transform_indices = @transform_1, window_bounds = array<i64: 768, 256>}, {pipeline_mode = #tpu.pipeline_mode<synchronous>, transform_indices = @transform_2, window_bounds = array<i64: 1, 256>}, {pipeline_mode = #tpu.pipeline_mode<synchronous>, transform_indices = @transform_3, window_bounds = array<i64: 256, 128>}, {pipeline_mode = #tpu.pipeline_mode<synchronous>, transform_indices = @transform_4, window_bounds = array<i64: 1, 128>}, {pipeline_mode = #tpu.pipeline_mode<synchronous>, transform_indices = @transform_5, window_bounds = array<i64: 128, 128>}, {pipeline_mode = #tpu.pipeline_mode<synchronous>, transform_indices = @transform_6, window_bounds = array<i64: 1, 128>}, {transform_indices = @transform_7, window_bounds = array<i64: 8, 128>}, {transform_indices = @transform_8, window_bounds = array<i64: 8, 128>}]} {
    %c0 = arith.constant 0 : index
    %c0_0 = arith.constant 0 : index
    %0 = vector.load %arg1[%c0, %c0_0] : memref<8x768xf32, #tpu.memory_space<vmem>>, vector<8x768xf32>
    %1 = arith.truncf %0 : vector<8x768xf32> to vector<8x768xbf16>
    %c0_1 = arith.constant 0 : index
    %c0_2 = arith.constant 0 : index
    %2 = vector.load %arg2[%c0_1, %c0_2] : memref<768x256xbf16, #tpu.memory_space<vmem>>, vector<768x256xbf16>
    %cst = arith.constant dense<0.000000e+00> : vector<8x256xf32>
    %3 = tpu.matmul %1, %2, %cst {dimension_numbers = #tpu.dot_dimension_numbers<[1], [0], [0], [1], [0, 0, 1, 1], [], []>} : vector<8x768xbf16>, vector<768x256xbf16>, vector<8x256xf32> -> vector<8x256xf32>
    %c0_3 = arith.constant 0 : index
    %c0_4 = arith.constant 0 : index
    %4 = vector.load %arg3[%c0_3, %c0_4] : memref<1x256xf32, #tpu.memory_space<vmem>>, vector<1x256xf32>
    %5 = vector.broadcast %4 : vector<1x256xf32> to vector<8x256xf32>
    %6 = arith.addf %3, %5 : vector<8x256xf32>
    %cst_5 = arith.constant 0.000000e+00 : f32
    %7 = vector.broadcast %cst_5 : f32 to vector<8x256xf32>
    %8 = arith.maximumf %6, %7 : vector<8x256xf32>
    %9 = arith.truncf %8 : vector<8x256xf32> to vector<8x256xbf16>
    %c0_6 = arith.constant 0 : index
    %c0_7 = arith.constant 0 : index
    %10 = vector.load %arg4[%c0_6, %c0_7] : memref<256x128xbf16, #tpu.memory_space<vmem>>, vector<256x128xbf16>
    %cst_8 = arith.constant dense<0.000000e+00> : vector<8x128xf32>
    %11 = tpu.matmul %9, %10, %cst_8 {dimension_numbers = #tpu.dot_dimension_numbers<[1], [0], [0], [1], [0, 0, 1, 1], [], []>} : vector<8x256xbf16>, vector<256x128xbf16>, vector<8x128xf32> -> vector<8x128xf32>
    %c0_9 = arith.constant 0 : index
    %c0_10 = arith.constant 0 : index
    %12 = vector.load %arg5[%c0_9, %c0_10] : memref<1x128xf32, #tpu.memory_space<vmem>>, vector<1x128xf32>
    %13 = vector.broadcast %12 : vector<1x128xf32> to vector<8x128xf32>
    %14 = arith.addf %11, %13 : vector<8x128xf32>
    %c0_11 = arith.constant 0 : index
    %c0_12 = arith.constant 0 : index
    %15 = vector.load %arg9[%c0_11, %c0_12] : memref<8x128xf32, #tpu.memory_space<vmem>>, vector<8x128xf32>
    tpu.vector_store %arg9[%c0_11, %c0_12], %14 {strides = array<i32>} : memref<8x128xf32, #tpu.memory_space<vmem>>, vector<8x128xf32>,
    %cst_13 = arith.constant 0.000000e+00 : f32
    %16 = vector.broadcast %cst_13 : f32 to vector<8x128xf32>
    %17 = arith.maximumf %14, %16 : vector<8x128xf32>
    %18 = arith.truncf %17 : vector<8x128xf32> to vector<8x128xbf16>
    %c0_14 = arith.constant 0 : index
    %c0_15 = arith.constant 0 : index
    %19 = vector.load %arg6[%c0_14, %c0_15] : memref<128x128xbf16, #tpu.memory_space<vmem>>, vector<128x128xbf16>
    %cst_16 = arith.constant dense<0.000000e+00> : vector<8x128xf32>
    %20 = tpu.matmul %18, %19, %cst_16 {dimension_numbers = #tpu.dot_dimension_numbers<[1], [0], [0], [1], [0, 0, 1, 1], [], []>} : vector<8x128xbf16>, vector<128x128xbf16>, vector<8x128xf32> -> vector<8x128xf32>
    %c0_17 = arith.constant 0 : index
    %c0_18 = arith.constant 0 : index
    %21 = vector.load %arg7[%c0_17, %c0_18] : memref<1x128xf32, #tpu.memory_space<vmem>>, vector<1x128xf32>
    %22 = vector.broadcast %21 : vector<1x128xf32> to vector<8x128xf32>
    %23 = arith.addf %20, %22 : vector<8x128xf32>
    %cst_19 = arith.constant dense<0xFF800000> : vector<8xf32>
    %24 = vector.multi_reduction <maximumf>, %23, %cst_19 [1] : vector<8x128xf32> to vector<8xf32>
    %25 = vector.shape_cast %24 : vector<8xf32> to vector<8x1xf32>
    %26 = vector.broadcast %25 : vector<8x1xf32> to vector<8x128xf32>
    %27 = arith.subf %23, %26 : vector<8x128xf32>
    %28 = math.exp %27 : vector<8x128xf32>
    %cst_20 = arith.constant dense<0.000000e+00> : vector<8xf32>
    %29 = vector.multi_reduction <add>, %28, %cst_20 [1] : vector<8x128xf32> to vector<8xf32>
    %30 = vector.shape_cast %29 : vector<8xf32> to vector<8x1xf32>
    %31 = math.log %30 : vector<8x1xf32>
    %32 = vector.broadcast %31 : vector<8x1xf32> to vector<8x128xf32>
    %33 = arith.subf %27, %32 : vector<8x128xf32>
    %c0_21 = arith.constant 0 : index
    %c0_22 = arith.constant 0 : index
    %34 = vector.load %arg8[%c0_21, %c0_22] : memref<8x128xf32, #tpu.memory_space<vmem>>, vector<8x128xf32>
    tpu.vector_store %arg8[%c0_21, %c0_22], %33 {strides = array<i32>} : memref<8x128xf32, #tpu.memory_space<vmem>>, vector<8x128xf32>,
    return
  }
  func.func @transform_0(%arg0: i32) -> (i32, i32) {
    %c0_i32 = arith.constant 0 : i32
    %c0_i32_0 = arith.constant 0 : i32
    return %arg0, %c0_i32 : i32, i32
  }
  func.func @transform_1(%arg0: i32) -> (i32, i32) {
    %c0_i32 = arith.constant 0 : i32
    %c0_i32_0 = arith.constant 0 : i32
    %c0_i32_1 = arith.constant 0 : i32
    return %c0_i32, %c0_i32_0 : i32, i32
  }
  func.func @transform_2(%arg0: i32) -> (i32, i32) {
    %c0_i32 = arith.constant 0 : i32
    %c0_i32_0 = arith.constant 0 : i32
    %c0_i32_1 = arith.constant 0 : i32
    return %c0_i32, %c0_i32_0 : i32, i32
  }
  func.func @transform_3(%arg0: i32) -> (i32, i32) {
    %c0_i32 = arith.constant 0 : i32
    %c0_i32_0 = arith.constant 0 : i32
    %c0_i32_1 = arith.constant 0 : i32
    return %c0_i32, %c0_i32_0 : i32, i32
  }
  func.func @transform_4(%arg0: i32) -> (i32, i32) {
    %c0_i32 = arith.constant 0 : i32
    %c0_i32_0 = arith.constant 0 : i32
    %c0_i32_1 = arith.constant 0 : i32
    return %c0_i32, %c0_i32_0 : i32, i32
  }
  func.func @transform_5(%arg0: i32) -> (i32, i32) {
    %c0_i32 = arith.constant 0 : i32
    %c0_i32_0 = arith.constant 0 : i32
    %c0_i32_1 = arith.constant 0 : i32
    return %c0_i32, %c0_i32_0 : i32, i32
  }
  func.func @transform_6(%arg0: i32) -> (i32, i32) {
    %c0_i32 = arith.constant 0 : i32
    %c0_i32_0 = arith.constant 0 : i32
    %c0_i32_1 = arith.constant 0 : i32
    return %c0_i32, %c0_i32_0 : i32, i32
  }
  func.func @transform_7(%arg0: i32) -> (i32, i32) {
    %c0_i32 = arith.constant 0 : i32
    %c0_i32_0 = arith.constant 0 : i32
    return %arg0, %c0_i32 : i32, i32
  }
  func.func @transform_8(%arg0: i32) -> (i32, i32) {
    %c0_i32 = arith.constant 0 : i32
    %c0_i32_0 = arith.constant 0 : i32
    return %arg0, %c0_i32 : i32, i32
  }
}

</mosaic_0001>

<bundles_post_ra>
// kernel: tpu_custom_call.1
= control target key start
LH: loop header
LB: loop body
LE: loop exit
PB: predicated region body
PF: predicated region fallthrough
CT: control target
= control target key end

     0   :  { %14 = vsyncpa [#allocation3], 0  ;;  %s1910_s0 = inlined_call_operand.hbm [shape: f32[2,768], index: 0, kind: input, shape index: {}]   ;;  %s1911_s1 = inlined_call_operand.hbm [shape: bf16[768,256], index: 1, kind: input, shape index: {}]   ;;  %s1912_s2 = inlined_call_operand.vmem [shape: f32[1,256], index: 2, kind: input, shape index: {}]   ;;  %s1913_s3 = inlined_call_operand.hbm [shape: bf16[256,128], index: 3, kind: input, shape index: {}]   ;;  %s1914_s4 = inlined_call_operand.vmem [shape: f32[1,128], index: 4, kind: input, shape index: {}]   ;;  %s1915_s5 = inlined_call_operand.hbm [shape: bf16[128,128], index: 5, kind: input, shape index: {}]   ;;  %s1916_s6 = inlined_call_operand.vmem [shape: f32[1,128], index: 6, kind: input, shape index: {}]   ;;  %s1917_s7 = inlined_call_operand.hbm [shape: f32[2,128], index: 7, kind: output, shape index: {0}]   ;;  %s1918_s8 = inlined_call_operand.hbm [shape: f32[2,128], index: 8, kind: output, shape index: {1}]  }
   0x1   :  { %15 = vsyncpa [#allocation6], 0 }
   0x2   :  { %16 = vsyncpa [#allocation9], 0 }
   0x3   :  { %17 = vsyncpa [#allocation4], 0 }
   0x4   :  { %18 = vsyncpa [#allocation12], 0 }
   0x5   :  { %23 = vsyncadd [#allocation3], 576  ;;  %s1738_s27 = smov [#allocation5]   ;;  %s1596_s9 = scalar_lea.hbm %s1911_s1, 12288 }
   0x6   :  { %s36_s28 = sshll.u32 %s1738_s27, 4  ;;  %p1597_p0 = scmp.ne.s32.totalorder %s1911_s1, %s1596_s9  ;;  %s37_s28 = int_to_ptr.vmem [resolvable:$true] %s36_s28 }
   0x7   :  { %p1600_p1 = scmp.lt.u32.totalorder %s1596_s9, %s1911_s1 }
   0x9   :  { %p1602_p2 = pnand %p1600_p1, %p1597_p0 }
   0xb   :  { %1605 = shalt.err (!%p1602_p2)
}
   0xc   :  { %s1606_s14 = scalar_lea.vmem %s37_s28, 12288  ;;  %p1611_p4 = scmp.lt.s32.totalorder %s37_s28, %s37_s28 }
   0xd   :  { %p1607_p3 = scmp.ne.s32.totalorder %s37_s28, %s1606_s14  ;;  %p1612_p5 = scmp.lt.s32.totalorder %s1606_s14, %s1606_s14 }
   0xf   :  { %p1613_p6 = por %p1612_p5, %p1611_p4 }
  0x11   :  { %p1614_p7 = pnand %p1613_p6, %p1607_p3 }
  0x13   :  { %1617 = shalt.err (!%p1614_p7)
}
  0x14   :  { %s1739_s15 = smov 128   ;;  %s1740_s16 = smov 8  }
  0x15   :  { %42 = dma.hbm_to_vmem [thread:$0]  %s1911_s1, 12288, %s37_s28, [#allocation6], %s1739_s15, %s1739_s15, %s1740_s16  }
  0x16   :  { %s1741_s19 = smov [#allocation2]   ;;  %s1618_s23 = scalar_lea.hbm %s1910_s0, 192 }
  0x17   :  { %s24_s20 = sshll.u32 %s1741_s19, 4  ;;  %p1619_p8 = scmp.ne.s32.totalorder %s1910_s0, %s1618_s23  ;;  %s25_s20 = int_to_ptr.vmem [resolvable:$true] %s24_s20 }
  0x18   :  { %p1622_p9 = scmp.lt.u32.totalorder %s1618_s23, %s1910_s0 }
  0x1a   :  { %p1624_p10 = pnand %p1622_p9, %p1619_p8 }
  0x1c   :  { %1627 = shalt.err (!%p1624_p10)
}
  0x1d   :  { %s1628_s29 = scalar_lea.vmem %s25_s20, 192  ;;  %s1632_s1 = scalar_lea.vmem %s25_s20, 768 }
  0x1e   :  { %p1629_p11 = scmp.ne.s32.totalorder %s25_s20, %s1628_s29  ;;  %p1633_p12 = scmp.lt.s32.totalorder %s25_s20, %s25_s20 }
  0x1f   :  { %p1634_p13 = scmp.lt.s32.totalorder %s1632_s1, %s1628_s29 }
  0x21   :  { %p1635_p0 = por %p1634_p13, %p1633_p12 }
  0x23   :  { %p1636_p1 = pnand %p1635_p0, %p1629_p11 }
  0x25   :  { %1639 = shalt.err (!%p1636_p1)
}
  0x26   :  { %s1742_s28 = smov 192   ;;  %s1743_s30 = smov 12  }
  0x27   :  { %30 = dma.hbm_to_vmem [thread:$0]  %s1910_s0, 192, %s25_s20, [#allocation3], %s1742_s28, %s1742_s28, %s1743_s30  }
  0x28   :  { %s1744_s11 = smov [#allocation7]   ;;  %s1640_s15 = scalar_lea.hbm %s1913_s3, 2048 }
  0x29   :  { %s50_s12 = sshll.u32 %s1744_s11, 4  ;;  %p1641_p2 = scmp.ne.s32.totalorder %s1913_s3, %s1640_s15  ;;  %s51_s12 = int_to_ptr.vmem [resolvable:$true] %s50_s12 }
  0x2a   :  { %p1644_p3 = scmp.lt.u32.totalorder %s1640_s15, %s1913_s3 }
  0x2c   :  { %p1646_p4 = pnand %p1644_p3, %p1641_p2 }
  0x2e   :  { %1649 = shalt.err (!%p1646_p4)
}
  0x2f   :  { %s1650_s21 = scalar_lea.vmem %s51_s12, 2048  ;;  %p1655_p6 = scmp.lt.s32.totalorder %s51_s12, %s51_s12 }
  0x30   :  { %p1651_p5 = scmp.ne.s32.totalorder %s51_s12, %s1650_s21  ;;  %p1656_p7 = scmp.lt.s32.totalorder %s1650_s21, %s1650_s21 }
  0x32   :  { %p1657_p8 = por %p1656_p7, %p1655_p6 }
  0x34   :  { %p1658_p9 = pnand %p1657_p8, %p1651_p5 }
  0x36   :  { %1661 = shalt.err (!%p1658_p9)
}
  0x37   :  { %s1745_s0 = smov 64   ;;  %s1746_s20 = smov 4  }
  0x38   :  { %56 = dma.hbm_to_vmem [thread:$0]  %s1913_s3, 2048, %s51_s12, [#allocation6], %s1745_s0, %s1745_s0, %s1746_s20  }
  0x39   :  { %s1747_s24 = smov [#allocation8]   ;;  %s1662_s29 = scalar_lea.hbm %s1915_s5, 1024 }
  0x3a   :  { %s64_s25 = sshll.u32 %s1747_s24, 4  ;;  %p1663_p10 = scmp.ne.s32.totalorder %s1915_s5, %s1662_s29  ;;  %s65_s25 = int_to_ptr.vmem [resolvable:$true] %s64_s25 }
  0x3b   :  { %p1666_p11 = scmp.lt.u32.totalorder %s1662_s29, %s1915_s5 }
  0x3d   :  { %p1668_p12 = pnand %p1666_p11, %p1663_p10 }
  0x3f   :  { %1671 = shalt.err (!%p1668_p12)
}
  0x40   :  { %s1672_s10 = scalar_lea.vmem %s65_s25, 1024  ;;  %p1677_p0 = scmp.lt.s32.totalorder %s65_s25, %s65_s25 }
  0x41   :  { %p1673_p13 = scmp.ne.s32.totalorder %s65_s25, %s1672_s10  ;;  %p1678_p1 = scmp.lt.s32.totalorder %s1672_s10, %s1672_s10 }
  0x43   :  { %p1679_p2 = por %p1678_p1, %p1677_p0 }
  0x45   :  { %p1680_p3 = pnand %p1679_p2, %p1673_p13 }
  0x47   :  { %1683 = shalt.err (!%p1680_p3)
}
  0x48   :  { %70 = dma.hbm_to_vmem [thread:$0]  %s1915_s5, 1024, %s65_s25, [#allocation9], %s1745_s0, %s1745_s0, %s1746_s20  }
  0x49   :  { %1728 = dma.done.wait [#allocation3], 768  }
  0x4a   :  { %1729 = vsyncadd [#allocation3], 4294966528 }
  0x4b   :  { %1730 = dma.done.wait [#allocation6], 14336  }
  0x4c   :  { %1731 = vsyncadd [#allocation6], 4294952960 }
  0x4d   :  { %1732 = dma.done.wait [#allocation9], 1024  }
  0x4e   :  { %1733 = vsyncadd [#allocation9], 4294966272  ;;  %v1416_v0 = vld [vmem:[#allocation5 + $0x104] ss:$8 sps:$4 sm:$0xff]   ;;  %v1418_v1 = vld [vmem:[#allocation5 + $0x100] ss:$8 sps:$4 sm:$0xff]   ;;  %v109_v12 = vlaneseq }
  0x4f   :  { %797 = vmatprep.subr.bf16.mxu0 %v1416_v0  ;;  %v1419_v2 = vld [vmem:[#allocation5 + $0x114] ss:$8 sps:$4 sm:$0xff]   ;;  %v1421_v3 = vld [vmem:[#allocation5 + $0x110] ss:$8 sps:$4 sm:$0xff]   ;;  %v1422_v4 = vld [vmem:[#allocation5 + $0x124] ss:$8 sps:$4 sm:$0xff]  }
  0x50   :  { %798 = vmatpush1.bf16.msra.mxu0 %v1418_v1  ;;  %v1424_v5 = vld [vmem:[#allocation5 + $0x120] ss:$8 sps:$4 sm:$0xff]   ;;  %v1425_v6 = vld [vmem:[#allocation5 + $0x134] ss:$8 sps:$4 sm:$0xff]   ;;  %v1427_v7 = vld [vmem:[#allocation5 + $0x130] ss:$8 sps:$4 sm:$0xff]  }
  0x51   :  { %799 = vmatprep.subr.bf16.mxu0 %v1419_v2  ;;  %v1428_v8 = vld [vmem:[#allocation5 + $0x144] ss:$8 sps:$4 sm:$0xff]   ;;  %v1430_v9 = vld [vmem:[#allocation5 + $0x140] ss:$8 sps:$4 sm:$0xff]   ;;  %v1748_v10 = vmov 1983009808  }
  0x52   :  { %v107_v11 = vunpack.c.l.s4 %v1748_v10  ;;  %v1431_v13 = vld [vmem:[#allocation5 + $0x154] ss:$8 sps:$4 sm:$0xff]   ;;  %v1433_v14 = vld [vmem:[#allocation5 + $0x150] ss:$8 sps:$4 sm:$0xff]   ;;  %v1434_v15 = vld [vmem:[#allocation5 + $0x164] ss:$8 sps:$4 sm:$0xff]  }
  0x53   :  { %v1848_v17 = vshrl.u32 %v109_v12, 7  ;;  %v1461_v18 = vld [vmem:[#allocation5 + $0x4] ss:$8 sps:$4 sm:$0xff]   ;;  %v1463_v19 = vld [vmem:[#allocation5] ss:$8 sps:$4 sm:$0xff]   ;;  %vm1750_vm0 = vmmov 0  }
  0x54   :  { %800 = vmatpush1.bf16.msra.mxu0 %v1421_v3  ;;  %v108_v16 = vunpack.c.0.s8 %v107_v11  ;;  %v1436_v20 = vld [vmem:[#allocation5 + $0x160] ss:$8 sps:$4 sm:$0xff]   ;;  %v1437_v21 = vld [vmem:[#allocation5 + $0x174] ss:$8 sps:$4 sm:$0xff]   ;;  %756 = vmatprep.subr.bf16.mxu1 %v1461_v18  ;;  %v1469_v23 = vld [vmem:[#allocation5 + $0x10] ss:$8 sps:$4 sm:$0xff]  }
  0x55   :  { %801 = vmatprep.subr.bf16.mxu0 %v1422_v4  ;;  %757 = vmatpush1.bf16.msra.mxu1 %v1463_v19  ;;  %v1467_v22 = vld [vmem:[#allocation5 + $0x14] ss:$8 sps:$4 sm:$0xff]   ;;  %v1472_v26 = vld [vmem:[#allocation2 + $0x1c] ss:$12 sps:$4 sm:$0xff]   ;;  %v1479_v32 = vld [vmem:[#allocation5 + $0x20] ss:$8 sps:$4 sm:$0xff]  }
  0x56   :  { %v1851_v24 = vsub.s32 %v108_v16, %v1848_v17  ;;  %758 = vmatprep.subr.bf16.mxu1 %v1467_v22  ;;  %v1470_v25 = vld [vmem:[#allocation2 + $0x4] ss:$12 sps:$4 sm:$0xff]   ;;  %v1439_v27 = vld [vmem:[#allocation5 + $0x170] ss:$8 sps:$4 sm:$0xff]   ;;  %v1440_v28 = vld [vmem:[#allocation5 + $0x184] ss:$8 sps:$4 sm:$0xff]  }
  0x57   :  { %v1477_v31 = vld [vmem:[#allocation5 + $0x24] ss:$8 sps:$4 sm:$0xff]   ;;  %v1442_v33 = vld [vmem:[#allocation5 + $0x180] ss:$8 sps:$4 sm:$0xff]   ;;  %v1483_v35 = vld [vmem:[#allocation5 + $0x34] ss:$8 sps:$4 sm:$0xff]  }
  0x58   :  { %802 = vmatpush1.bf16.msra.mxu0 %v1424_v5  ;;  %v1854_v29 = vrot.slane %v1470_v25, %v1851_v24  ;;  %v1857_v30 = vrot.slane %v1472_v26, %v1851_v24  ;;  %v1485_v37 = vld [vmem:[#allocation5 + $0x30] ss:$8 sps:$4 sm:$0xff]   ;;  %v1443_v38 = vld [vmem:[#allocation5 + $0x194] ss:$8 sps:$4 sm:$0xff]   ;;  %v1489_v39 = vld [vmem:[#allocation5 + $0x44] ss:$8 sps:$4 sm:$0xff]  }
  0x59   :  { %803 = vmatprep.subr.bf16.mxu0 %v1425_v6  ;;  %759 = vmatpush1.bf16.msra.mxu1 %v1469_v23  ;;  %v1445_v40 = vld [vmem:[#allocation5 + $0x190] ss:$8 sps:$4 sm:$0xff]   ;;  %v1491_v41 = vld [vmem:[#allocation5 + $0x40] ss:$8 sps:$4 sm:$0xff]   ;;  %v1446_v42 = vld [vmem:[#allocation5 + $0x1a4] ss:$8 sps:$4 sm:$0xff]  }
  0x5a   :  { %v137_v34 = vcombine.high %v1854_v29, %v1857_v30  ;;  %760 = vmatprep.subr.bf16.mxu1 %v1477_v31  ;;  %v1495_v43 = vld [vmem:[#allocation5 + $0x54] ss:$8 sps:$4 sm:$0xff]   ;;  %v1448_v44 = vld [vmem:[#allocation5 + $0x1a0] ss:$8 sps:$4 sm:$0xff]   ;;  %v1497_v45 = vld [vmem:[#allocation5 + $0x50] ss:$8 sps:$4 sm:$0xff]   ;;  %v136_v1 = vcombine.low %v1854_v29, %v1857_v30 }
  0x5b   :  { %v1449_v46 = vld [vmem:[#allocation5 + $0x1b4] ss:$8 sps:$4 sm:$0xff]   ;;  %v1501_v47 = vld [vmem:[#allocation5 + $0x64] ss:$8 sps:$4 sm:$0xff]   ;;  %v1451_v48 = vld [vmem:[#allocation5 + $0x1b0] ss:$8 sps:$4 sm:$0xff]  }
  0x5c   :  { %804 = vmatpush1.bf16.msra.mxu0 %v1427_v7  ;;  %v165_v36 = vpack.c.bf16 %v137_v34, %v137_v34  ;;  %v1503_v49 = vld [vmem:[#allocation5 + $0x60] ss:$8 sps:$4 sm:$0xff]   ;;  %v1452_v50 = vld [vmem:[#allocation5 + $0x1c4] ss:$8 sps:$4 sm:$0xff]   ;;  %v1507_v51 = vld [vmem:[#allocation5 + $0x74] ss:$8 sps:$4 sm:$0xff]   ;;  %v164_v6 = vpack.c.bf16 %v136_v1, %v136_v1 }
  0x5d   :  { %805 = vmatprep.subr.bf16.mxu0 %v1428_v8  ;;  %761 = vmatpush1.bf16.msra.mxu1 %v1479_v32  ;;  %v1454_v52 = vld [vmem:[#allocation5 + $0x1c0] ss:$8 sps:$4 sm:$0xff]   ;;  %v1509_v53 = vld [vmem:[#allocation5 + $0x70] ss:$8 sps:$4 sm:$0xff]   ;;  %v1455_v54 = vld [vmem:[#allocation5 + $0x1d4] ss:$8 sps:$4 sm:$0xff]  }
  0x5e   :  { %762 = vmatprep.subr.bf16.mxu1 %v1483_v35  ;;  %829 = vmatprep.mubr.bf16.mxu0 %v165_v36  ;;  %v1513_v55 = vld [vmem:[#allocation5 + $0x84] ss:$8 sps:$4 sm:$0xff]   ;;  %v1457_v56 = vld [vmem:[#allocation5 + $0x1d0] ss:$8 sps:$4 sm:$0xff]   ;;  %v1515_v57 = vld [vmem:[#allocation5 + $0x80] ss:$8 sps:$4 sm:$0xff]  }
  0x5f   :  { %v1458_v58 = vld [vmem:[#allocation5 + $0x1e4] ss:$8 sps:$4 sm:$0xff]   ;;  %v1519_v59 = vld [vmem:[#allocation5 + $0x94] ss:$8 sps:$4 sm:$0xff]   ;;  %v1460_v60 = vld [vmem:[#allocation5 + $0x1e0] ss:$8 sps:$4 sm:$0xff]  }
  0x60   :  { %806 = vmatpush1.bf16.msra.mxu0 %v1430_v9  ;;  %v1521_v61 = vld [vmem:[#allocation5 + $0x90] ss:$8 sps:$4 sm:$0xff]   ;;  %v1464_v62 = vld [vmem:[#allocation5 + $0x1f4] ss:$8 sps:$4 sm:$0xff]   ;;  %v1525_v63 = vld [vmem:[#allocation5 + $0xa4] ss:$8 sps:$4 sm:$0xff]  }
  0x61   :  { %807 = vmatprep.subr.bf16.mxu0 %v1431_v13  ;;  %763 = vmatpush1.bf16.msra.mxu1 %v1485_v37  ;;  %v1466_v0 = vld [vmem:[#allocation5 + $0x1f0] ss:$8 sps:$4 sm:$0xff]   ;;  %v1527_v2 = vld [vmem:[#allocation5 + $0xa0] ss:$8 sps:$4 sm:$0xff]   ;;  %v1476_v3 = vld [vmem:[#allocation5 + $0x204] ss:$8 sps:$4 sm:$0xff]  }
  0x62   :  { %764 = vmatprep.subr.bf16.mxu1 %v1489_v39  ;;  %v1531_v4 = vld [vmem:[#allocation5 + $0xb4] ss:$8 sps:$4 sm:$0xff]   ;;  %v1474_v5 = vld [vmem:[#allocation5 + $0x200] ss:$8 sps:$4 sm:$0xff]   ;;  %v1533_v7 = vld [vmem:[#allocation5 + $0xb0] ss:$8 sps:$4 sm:$0xff]  }
  0x63   :  { %v1482_v8 = vld [vmem:[#allocation5 + $0x214] ss:$8 sps:$4 sm:$0xff]   ;;  %v1537_v9 = vld [vmem:[#allocation5 + $0xc4] ss:$8 sps:$4 sm:$0xff]   ;;  %v1480_v11 = vld [vmem:[#allocation5 + $0x210] ss:$8 sps:$4 sm:$0xff]  }
  0x64   :  { %808 = vmatpush1.bf16.msra.mxu0 %v1433_v14  ;;  %v1561_v10 = vld [vmem:[#allocation2] ss:$12 sps:$4 sm:$0xff]   ;;  %v1562_v12 = vld [vmem:[#allocation2 + $0x18] ss:$12 sps:$4 sm:$0xff]   ;;  %v1488_v13 = vld [vmem:[#allocation5 + $0x224] ss:$8 sps:$4 sm:$0xff]  }
  0x65   :  { %809 = vmatprep.subr.bf16.mxu0 %v1434_v15  ;;  %765 = vmatpush1.bf16.msra.mxu1 %v1491_v41  ;;  %v1539_v14 = vld [vmem:[#allocation5 + $0xc0] ss:$8 sps:$4 sm:$0xff]   ;;  %v1543_v15 = vld [vmem:[#allocation5 + $0xd4] ss:$8 sps:$4 sm:$0xff]   ;;  %v112_v16 = vrot.slane %v1561_v10, %v1851_v24  ;;  %v126_v18 = vrot.slane %v1562_v12, %v1851_v24  ;;  %v1566_v19 = vld [vmem:[#allocation2 + $0x8] ss:$12 sps:$4 sm:$0xff]  }
  0x66   :  { %766 = vmatprep.subr.bf16.mxu1 %v1495_v43  ;;  %v1494_v23 = vld [vmem:[#allocation5 + $0x234] ss:$8 sps:$4 sm:$0xff]   ;;  %v1866_v25 = vrot.slane %v1566_v19, %v1851_v24  ;;  %v1549_v29 = vld [vmem:[#allocation5 + $0xe4] ss:$8 sps:$4 sm:$0xff]   ;;  %v1492_v31 = vld [vmem:[#allocation5 + $0x230] ss:$8 sps:$4 sm:$0xff]  }
  0x67   :  { %v135_v22 = vcombine.high %v112_v16, %v126_v18  ;;  %v1500_v32 = vld [vmem:[#allocation5 + $0x244] ss:$8 sps:$4 sm:$0xff]   ;;  %v1551_v34 = vld [vmem:[#allocation5 + $0xe0] ss:$8 sps:$4 sm:$0xff]   ;;  %v1506_v36 = vld [vmem:[#allocation5 + $0x254] ss:$8 sps:$4 sm:$0xff]  }
  0x68   :  { %810 = vmatpush1.bf16.msra.mxu0 %v1436_v20  ;;  %v1567_v20 = vld [vmem:[#allocation2 + $0x20] ss:$12 sps:$4 sm:$0xff]   ;;  %v1498_v35 = vld [vmem:[#allocation5 + $0x240] ss:$8 sps:$4 sm:$0xff]  }
  0x69   :  { %811 = vmatprep.subr.bf16.mxu0 %v1437_v21  ;;  %767 = vmatpush1.bf16.msra.mxu1 %v1497_v45  ;;  %v1486_v21 = vld [vmem:[#allocation5 + $0x220] ss:$8 sps:$4 sm:$0xff]   ;;  %v1869_v26 = vrot.slane %v1567_v20, %v1851_v24  ;;  %v1555_v24 = vld [vmem:[#allocation5 + $0xf4] ss:$8 sps:$4 sm:$0xff]   ;;  %v1557_v37 = vld [vmem:[#allocation5 + $0xf0] ss:$8 sps:$4 sm:$0xff]  }
  0x6a   :  { %768 = vmatprep.subr.bf16.mxu1 %v1501_v47  ;;  %v1568_v39 = vld [vmem:[#allocation7 + $0x40] sm:$0xff]   ;;  %v1518_v47 = vld [vmem:[#allocation5 + $0x274] ss:$8 sps:$4 sm:$0xff]   ;;  %v1579_v10 = vld [vmem:[#allocation7 + $0x28] sm:$0xff]  }
  0x6b   :  { %v155_v30 = vcombine.high %v1866_v25, %v1869_v26  ;;  %v1569_v41 = vld [vmem:[#allocation7] sm:$0xff]   ;;  %v1554_v1 = vld [vmem:[#allocation5 + $0x2d4] ss:$8 sps:$4 sm:$0xff]  }
  0x6c   :  { %812 = vmatpush1.bf16.msra.mxu0 %v1439_v27  ;;  %v1545_v27 = vld [vmem:[#allocation5 + $0xd0] ss:$8 sps:$4 sm:$0xff]   ;;  %v1510_v45 = vld [vmem:[#allocation5 + $0x260] ss:$8 sps:$4 sm:$0xff]  }
  0x6d   :  { %813 = vmatprep.subr.bf16.mxu0 %v1440_v28  ;;  %769 = vmatpush1.bf16.msra.mxu1 %v1503_v49  ;;  %v163_v28 = vpack.c.bf16 %v135_v22, %v135_v22  ;;  %v1516_v49 = vld [vmem:[#allocation5 + $0x270] ss:$8 sps:$4 sm:$0xff]  }
  0x6e   :  { %770 = vmatprep.subr.bf16.mxu1 %v1507_v51  ;;  %v1524_v51 = vld [vmem:[#allocation5 + $0x284] ss:$8 sps:$4 sm:$0xff]   ;;  %v1581_v12 = vld [vmem:[#allocation7 + $0x30] sm:$0xff]  }
  0x6f   :  { %788 = vmatprep.mubr.bf16.mxu1 %v163_v28  ;;  %v264_v22 = vld [vmem:[%s1912_s2] sm:$0x3] }
  0x70   :  { %814 = vmatpush1.bf16.msra.mxu0 %v1442_v33  ;;  %v167_v33 = vpack.c.bf16 %v155_v30, %v155_v30 }
  0x71   :  { %815 = vmatprep.subr.bf16.mxu0 %v1443_v38  ;;  %771 = vmatpush1.bf16.msra.mxu1 %v1509_v53  ;;  %v134_v38 = vcombine.low %v112_v16, %v126_v18  ;;  %v1522_v53 = vld [vmem:[#allocation5 + $0x280] ss:$8 sps:$4 sm:$0xff]  }
  0x72   :  { %772 = vmatprep.subr.bf16.mxu1 %v1513_v55  ;;  %v1530_v55 = vld [vmem:[#allocation5 + $0x294] ss:$8 sps:$4 sm:$0xff]  }
  0x73   :  { %v162_v43 = vpack.c.bf16 %v134_v38, %v134_v38 }
  0x74   :  { %816 = vmatpush1.bf16.msra.mxu0 %v1445_v40  ;;  %v1504_v40 = vld [vmem:[#allocation5 + $0x250] ss:$8 sps:$4 sm:$0xff]  }
  0x75   :  { %817 = vmatprep.subr.bf16.mxu0 %v1446_v42  ;;  %773 = vmatpush1.bf16.msra.mxu1 %v1515_v57  ;;  %v1512_v42 = vld [vmem:[#allocation5 + $0x264] ss:$8 sps:$4 sm:$0xff]   ;;  %v1528_v57 = vld [vmem:[#allocation5 + $0x290] ss:$8 sps:$4 sm:$0xff]  }
  0x76   :  { %774 = vmatprep.subr.bf16.mxu1 %v1519_v59  ;;  %v1536_v59 = vld [vmem:[#allocation5 + $0x2a4] ss:$8 sps:$4 sm:$0xff]  }
  0x78   :  { %818 = vmatpush1.bf16.msra.mxu0 %v1448_v44  ;;  %v1570_v44 = vld [vmem:[#allocation7 + $0x48] sm:$0xff]  }
  0x79   :  { %819 = vmatprep.subr.bf16.mxu0 %v1449_v46  ;;  %775 = vmatpush1.bf16.msra.mxu1 %v1521_v61  ;;  %v1571_v46 = vld [vmem:[#allocation7 + $0x8] sm:$0xff]   ;;  %v1542_v61 = vld [vmem:[#allocation5 + $0x2b4] ss:$8 sps:$4 sm:$0xff]  }
  0x7a   :  { %776 = vmatprep.subr.bf16.mxu1 %v1525_v63  ;;  %v1548_v63 = vld [vmem:[#allocation5 + $0x2c4] ss:$8 sps:$4 sm:$0xff]  }
  0x7c   :  { %820 = vmatpush1.bf16.msra.mxu0 %v1451_v48  ;;  %v1572_v48 = vld [vmem:[#allocation7 + $0x50] sm:$0xff]  }
  0x7d   :  { %821 = vmatprep.subr.bf16.mxu0 %v1452_v50  ;;  %777 = vmatpush1.bf16.msra.mxu1 %v1527_v2  ;;  %v1573_v50 = vld [vmem:[#allocation7 + $0x10] sm:$0xff]  }
  0x7e   :  { %778 = vmatprep.subr.bf16.mxu1 %v1531_v4  ;;  %v1552_v2 = vld [vmem:[#allocation5 + $0x2d0] ss:$8 sps:$4 sm:$0xff]   ;;  %v1558_v4 = vld [vmem:[#allocation5 + $0x2e0] ss:$8 sps:$4 sm:$0xff]  }
  0x80   :  { %822 = vmatpush1.bf16.msra.mxu0 %v1454_v52  ;;  %v1574_v52 = vld [vmem:[#allocation7 + $0x58] sm:$0xff]  }
  0x81   :  { %823 = vmatprep.subr.bf16.mxu0 %v1455_v54  ;;  %779 = vmatpush1.bf16.msra.mxu1 %v1533_v7  ;;  %v1575_v54 = vld [vmem:[#allocation7 + $0x18] sm:$0xff]  }
  0x82   :  { %780 = vmatprep.subr.bf16.mxu1 %v1537_v9  ;;  %v1563_v7 = vld [vmem:[#allocation5 + $0x2f0] ss:$8 sps:$4 sm:$0xff]   ;;  %v1578_v9 = vld [vmem:[#allocation7 + $0x68] sm:$0xff]  }
  0x84   :  { %824 = vmatpush1.bf16.msra.mxu0 %v1457_v56  ;;  %v1576_v56 = vld [vmem:[#allocation7 + $0x60] sm:$0xff]  }
  0x85   :  { %825 = vmatprep.subr.bf16.mxu0 %v1458_v58  ;;  %781 = vmatpush1.bf16.msra.mxu1 %v1539_v14  ;;  %v1577_v58 = vld [vmem:[#allocation7 + $0x20] sm:$0xff]   ;;  %v1583_v14 = vld [vmem:[#allocation7 + $0x38] sm:$0xff]  }
  0x86   :  { %782 = vmatprep.subr.bf16.mxu1 %v1543_v15  ;;  %v1749_v15 = vmov 0.0  }
  0x88   :  { %826 = vmatpush1.bf16.msra.mxu0 %v1460_v60  ;;  %v1534_v60 = vld [vmem:[#allocation5 + $0x2a0] ss:$8 sps:$4 sm:$0xff]  }
  0x89   :  { %827 = vmatprep.subr.bf16.mxu0 %v1464_v62  ;;  %783 = vmatpush1.bf16.msra.mxu1 %v1545_v27  ;;  %v1540_v62 = vld [vmem:[#allocation5 + $0x2b0] ss:$8 sps:$4 sm:$0xff]  }
  0x8a   :  { %784 = vmatprep.subr.bf16.mxu1 %v1549_v29 }
  0x8c   :  { %828 = vmatpush1.bf16.msra.mxu0 %v1466_v0  ;;  %v1546_v0 = vld [vmem:[#allocation5 + $0x2c0] ss:$8 sps:$4 sm:$0xff]  }
  0x8d   :  { %838 = vmatprep.subr.bf16.mxu0 %v1476_v3  ;;  %785 = vmatpush1.bf16.msra.mxu1 %v1551_v34  ;;  %v1560_v3 = vld [vmem:[#allocation5 + $0x2e4] ss:$8 sps:$4 sm:$0xff]  }
  0x8e   :  { %786 = vmatprep.subr.bf16.mxu1 %v1555_v24 }
  0x8f   :  { %830 = vmatmul.mubr.bf16.vlgmr.msra.gmra.mrb[0].mxu0 %v164_v6  ;;  %v154_v6 = vcombine.low %v1866_v25, %v1869_v26 }
  0x90   :  { %839 = vmatpush1.bf16.msra.mxu0 %v1474_v5  ;;  %870 = vmatprep.mubr.bf16.mxu0 %v167_v33  ;;  %v1565_v5 = vld [vmem:[#allocation5 + $0x2f4] ss:$8 sps:$4 sm:$0xff]  }
  0x91   :  { %840 = vmatprep.subr.bf16.mxu0 %v1482_v8  ;;  %787 = vmatpush1.bf16.msra.mxu1 %v1557_v37  ;;  %v166_v8 = vpack.c.bf16 %v154_v6, %v154_v6  ;;  %v1584_v37 = vld [vmem:[#allocation8] sm:$0xff]  }
  0x92   :  { %1340 = vmatprep.subr.bf16.mxu1 %v1568_v39  ;;  %v1585_v39 = vld [vmem:[#allocation8 + $0x8] sm:$0xff]  }
  0x94   :  { %841 = vmatpush1.bf16.msra.mxu0 %v1480_v11  ;;  %789 = vmatmul.mubr.bf16.vlgmr.msra.gmra.mrb[0].mxu1 %v162_v43  ;;  %v1580_v11 = vld [vmem:[#allocation7 + $0x70] sm:$0xff]  }
  0x95   :  { %842 = vmatprep.subr.bf16.mxu0 %v1488_v13  ;;  %1341 = vmatpush3.bf16.msra.mxu1 %v1569_v41  ;;  %v1582_v13 = vld [vmem:[#allocation7 + $0x78] sm:$0xff]   ;;  %v1588_v41 = vld [vmem:[#allocation8 + $0x20] sm:$0xff]   ;;  %v1590_v43 = vld [vmem:[#allocation8 + $0x30] sm:$0xff]  }
  0x96   :  { %1342 = vmatprep.subr.bf16.mxu1 %v1570_v44  ;;  %v1591_v44 = vld [vmem:[#allocation8 + $0x38] sm:$0xff]  }
  0x98   :  { %843 = vmatpush1.bf16.msra.mxu0 %v1486_v21  ;;  %v268_v21 = vsub.s32 0, %v1848_v17 }
  0x99   :  { %844 = vmatprep.subr.bf16.mxu0 %v1494_v23  ;;  %1343 = vmatpush3.bf16.msra.mxu1 %v1571_v46  ;;  %v272_v23 = vsub.s32 1, %v1848_v17  ;;  %v1586_v17 = vld [vmem:[#allocation8 + $0x10] sm:$0xff]  }
  0x9a   :  { %1344 = vmatprep.subr.bf16.mxu1 %v1572_v48  ;;  %v269_v25 = vrot.slane %v264_v22, %v268_v21  ;;  %v1314_v46 = vld [vmem:[%s1914_s4] ss:$0 sm:$0xff] }
  0x9b   :  { %v273_v26 = vrot.slane %v264_v22, %v272_v23 }
  0x9c   :  { %845 = vmatpush1.bf16.msra.mxu0 %v1492_v31 }
  0x9d   :  { %846 = vmatprep.subr.bf16.mxu0 %v1500_v32  ;;  %1345 = vmatpush3.bf16.msra.mxu1 %v1573_v50 }
  0x9e   :  { %1346 = vmatprep.subr.bf16.mxu1 %v1574_v52 }
  0xa0   :  { %847 = vmatpush1.bf16.msra.mxu0 %v1498_v35 }
  0xa1   :  { %848 = vmatprep.subr.bf16.mxu0 %v1506_v36  ;;  %1347 = vmatpush3.bf16.msra.mxu1 %v1575_v54  ;;  %v1331_v54 = vld [vmem:[%s1916_s6] ss:$0 sm:$0xff] }
  0xa2   :  { %1348 = vmatprep.subr.bf16.mxu1 %v1576_v56 }
  0xa4   :  { %849 = vmatpush1.bf16.msra.mxu0 %v1504_v40  ;;  %v1587_v40 = vld [vmem:[#allocation8 + $0x18] sm:$0xff]  }
  0xa5   :  { %850 = vmatprep.subr.bf16.mxu0 %v1512_v42  ;;  %1349 = vmatpush3.bf16.msra.mxu1 %v1577_v58  ;;  %v1589_v42 = vld [vmem:[#allocation8 + $0x28] sm:$0xff]  }
  0xa6   :  { %1350 = vmatprep.subr.bf16.mxu1 %v1578_v9 }
  0xa8   :  { %851 = vmatpush1.bf16.msra.mxu0 %v1510_v45 }
  0xa9   :  { %852 = vmatprep.subr.bf16.mxu0 %v1518_v47  ;;  %1351 = vmatpush3.bf16.msra.mxu1 %v1579_v10 }
  0xaa   :  { %1352 = vmatprep.subr.bf16.mxu1 %v1580_v11 }
  0xac   :  { %853 = vmatpush1.bf16.msra.mxu0 %v1516_v49 }
  0xad   :  { %854 = vmatprep.subr.bf16.mxu0 %v1524_v51  ;;  %1353 = vmatpush3.bf16.msra.mxu1 %v1581_v12 }
  0xae   :  { %1354 = vmatprep.subr.bf16.mxu1 %v1582_v13 }
  0xb0   :  { %855 = vmatpush1.bf16.msra.mxu0 %v1522_v53 }
  0xb1   :  { %856 = vmatprep.subr.bf16.mxu0 %v1530_v55  ;;  %1355 = vmatpush3.bf16.msra.mxu1 %v1583_v14 }
  0xb2   :  { %1371 = vmatprep.subr.bf16.mxu1 %v1749_v15 }
  0xb4   :  { %857 = vmatpush1.bf16.msra.mxu0 %v1528_v57 }
  0xb5   :  { %858 = vmatprep.subr.bf16.mxu0 %v1536_v59 }
  0xb8   :  { %859 = vmatpush1.bf16.msra.mxu0 %v1534_v60 }
  0xb9   :  { %860 = vmatprep.subr.bf16.mxu0 %v1542_v61 }
  0xbc   :  { %861 = vmatpush1.bf16.msra.mxu0 %v1540_v62 }
  0xbd   :  { %862 = vmatprep.subr.bf16.mxu0 %v1548_v63 }
  0xc0   :  { %863 = vmatpush1.bf16.msra.mxu0 %v1546_v0 }
  0xc1   :  { %864 = vmatprep.subr.bf16.mxu0 %v1554_v1 }
  0xc4   :  { %865 = vmatpush1.bf16.msra.mxu0 %v1552_v2 }
  0xc5   :  { %866 = vmatprep.subr.bf16.mxu0 %v1560_v3 }
  0xc8   :  { %867 = vmatpush1.bf16.msra.mxu0 %v1558_v4 }
  0xc9   :  { %868 = vmatprep.subr.bf16.mxu0 %v1565_v5 }
  0xcc   :  { %869 = vmatpush1.bf16.msra.mxu0 %v1563_v7 }
  0xcf   :  { %871 = vmatmul.mubr.bf16.vlgmr.msra.gmra.mrb[0].mxu0 %v166_v8 }
 0x167   :  { %v790_v16 = vpop.f32.mrb[0].mxu1 }
 0x168   :  { %v792_v18 = vpop.f32.mrb[1].mxu1  ;;  %v791_v27 = vadd.f32 %v790_v16, %v269_v25 }
 0x169   :  { %v794_v19 = vpop.f32.mrb[2].mxu1  ;;  %v793_v28 = vadd.f32 %v792_v18, %v273_v26 }
 0x16a   :  { %v795_v20 = vpop.f32.mrb[3].mxu1 }
 0x1a2   :  { %v872_v29 = vpop.f32.mrb[0].mxu0 }
 0x1a3   :  { %v1392_v30 = vadd.f32 %v872_v29, %v791_v27  ;;  %v874_v31 = vpop.f32.mrb[1].mxu0 }
 0x1a4   :  { %v1394_v32 = vadd.f32 %v874_v31, %v793_v28  ;;  %v876_v33 = vpop.f32.mrb[2].mxu0 }
 0x1a5   :  { %v879_v34 = vmax.f32 %v1392_v30, 0.0  ;;  %v877_v24 = vpop.f32.mrb[3].mxu0 }
 0x1a6   :  { %v880_v35 = vmax.f32 %v1394_v32, 0.0 }
 0x1a7   :  { %v881_v38 = vpack.c.bf16 %v879_v34, %v879_v34 }
 0x1a8   :  { %v882_v36 = vpack.c.bf16 %v880_v35, %v880_v35 }
 0x1aa   :  { %1050 = vmatprep.mubr.bf16.mxu1 %v882_v36 }
 0x1ab   :  { %1051 = vmatmul.mubr.bf16.vlgmr.msra.gmra.mrb[4].mxu1 %v881_v38 }
 0x1ac   :  { %1372 = vmatpush3.bf16.msra.mxu1 %v1584_v37  ;;  %1387 = vmatprep.mubr.msk.bf16.mxu1 %vm1750_vm0, %v1749_v15 }
 0x1ad   :  { %1373 = vmatprep.subr.bf16.mxu1 %v1749_v15 }
 0x1b0   :  { %1374 = vmatpush3.bf16.msra.mxu1 %v1585_v39 }
 0x1b1   :  { %1375 = vmatprep.subr.bf16.mxu1 %v1749_v15 }
 0x1b4   :  { %1376 = vmatpush3.bf16.msra.mxu1 %v1586_v17 }
 0x1b5   :  { %1377 = vmatprep.subr.bf16.mxu1 %v1749_v15 }
 0x1b8   :  { %1378 = vmatpush3.bf16.msra.mxu1 %v1587_v40 }
 0x1b9   :  { %1379 = vmatprep.subr.bf16.mxu1 %v1749_v15 }
 0x1bc   :  { %1380 = vmatpush3.bf16.msra.mxu1 %v1588_v41 }
 0x1bd   :  { %1381 = vmatprep.subr.bf16.mxu1 %v1749_v15 }
 0x1c0   :  { %1382 = vmatpush3.bf16.msra.mxu1 %v1589_v42 }
 0x1c1   :  { %1383 = vmatprep.subr.bf16.mxu1 %v1749_v15 }
 0x1c4   :  { %1384 = vmatpush3.bf16.msra.mxu1 %v1590_v43 }
 0x1c5   :  { %1385 = vmatprep.subr.bf16.mxu1 %v1749_v15 }
 0x1c8   :  { %1386 = vmatpush3.bf16.msra.mxu1 %v1591_v44 }
 0x27e   :  { %v1356_v45 = vpop.f32.mrb[4].mxu1 }
 0x27f   :  { %v1357_v47 = vpop.f32.mrb[5].mxu1 }
 0x280   :  { %v1358_v48 = vadd.f32 %v1357_v47, %v1356_v45  ;;  %v1359_v49 = vpop.f32.mrb[6].mxu1 }
 0x281   :  { %v1360_v50 = vpop.f32.mrb[7].mxu1 }
 0x282   :  { %v1053_v51 = vadd.f32 %v1358_v48, %v1314_v46 }
 0x284   :  { %1058 = vst [vmem:[#allocation11] sm:$0xff] %v1053_v51  ;;  %v1059_v52 = vmax.f32 %v1053_v51, 0.0 }
 0x286   :  { %v1060_v53 = vpack.c.bf16 %v1059_v52, %v1059_v52 }
 0x288   :  { %1388 = vmatmul.mubr.bf16.vlgmr.msra.gmra.mrb[8].mxu1 %v1060_v53 }
 0x35b   :  { %v1166_v55 = vpop.f32.mrb[8].mxu1 }
 0x35c   :  { %v1167_v56 = vadd.f32 %v1331_v54, %v1166_v55  ;;  %v1389_v57 = vpop.f32.mrb[9].mxu1 }
 0x35d   :  { %v1169_v58 = vpop.f32.mrb[10].mxu1 }
 0x35e   :  { %1172 = vmax.xlane.f32.xlu0 %v1167_v56  ;;  %v1390_v59 = vpop.f32.mrb[11].mxu1 }
 0x3eb   :  { %v1173_v60 = vpop.xlane.xlu0 %1172 }
 0x3ec   :  { %v1174_v61 = vsub.f32 %v1167_v56, %v1173_v60 }
 0x3ee   :  { %v1175_v62 = vmul.f32 1.442695, %v1174_v61 }
 0x3f0   :  { %1592 = vpow2.f32 %v1175_v62 }
 0x3fa   :  { %v1593_v63 = vpop.eup %1592 }
 0x3fb   :  { %1177 = vadd.xlane.f32.xlu0 %v1593_v63 }
 0x488   :  { %v1178_v0 = vpop.xlane.xlu0 %1177 }
 0x489   :  { %1594 = vlog2.f32 %v1178_v0 }
 0x493   :  { %v1595_v1 = vpop.eup %1594 }
 0x494   :  { %v1180_v2 = vmul.f32 0.6931472, %v1595_v1 }
 0x496   :  { %v1181_v3 = vsub.f32 %v1174_v61, %v1180_v2 }
 0x498   :  { %1182 = vst [vmem:[#allocation10] sm:$0xff] %v1181_v3 }
 0x499   :  { %1187 = vsyncadd [#allocation4], 96  ;;  %s1751_s4 = smov [#allocation10]  }
 0x49a   :  { %s1188_s6 = sshll.u32 %s1751_s4, 4  ;;  %s1189_s6 = int_to_ptr.vmem [resolvable:$true] %s1188_s6 }
 0x49b   :  { %s1684_s16 = scalar_lea.vmem %s1189_s6, 32  ;;  %s1688_s17 = scalar_lea.vmem %s1189_s6, 128 }
 0x49c   :  { %p1685_p4 = scmp.ne.s32.totalorder %s1189_s6, %s1684_s16  ;;  %p1689_p5 = scmp.lt.s32.totalorder %s1189_s6, %s1189_s6 }
 0x49d   :  { %p1690_p6 = scmp.lt.s32.totalorder %s1688_s17, %s1684_s16 }
 0x49f   :  { %p1691_p7 = por %p1690_p6, %p1689_p5 }
 0x4a1   :  { %p1692_p8 = pnand %p1691_p7, %p1685_p4 }
 0x4a3   :  { %1695 = shalt.err (!%p1692_p8)
}
 0x4a4   :  { %s1696_s21 = scalar_lea.hbm %s1917_s7, 32 }
 0x4a5   :  { %p1697_p9 = scmp.ne.s32.totalorder %s1917_s7, %s1696_s21  ;;  %p1700_p10 = scmp.lt.u32.totalorder %s1696_s21, %s1917_s7 }
 0x4a7   :  { %p1702_p11 = pnand %p1700_p10, %p1697_p9 }
 0x4a9   :  { %1705 = shalt.err (!%p1702_p11)
}
 0x4aa   :  { %s1752_s24 = smov 32   ;;  %s1753_s25 = smov 2  }
 0x4ab   :  { %1194 = dma.vmem_to_hbm [thread:$0]  %s1189_s6, 32, %s1917_s7, [#allocation4], %s1752_s24, %s1752_s24, %s1753_s25  }
 0x4ac   :  { %1199 = vsyncadd [#allocation12], 96  ;;  %s1754_s29 = smov [#allocation11]  }
 0x4ad   :  { %s1200_s1 = sshll.u32 %s1754_s29, 4  ;;  %s1201_s1 = int_to_ptr.vmem [resolvable:$true] %s1200_s1 }
 0x4ae   :  { %s1706_s28 = scalar_lea.vmem %s1201_s1, 32  ;;  %s1710_s30 = scalar_lea.vmem %s1201_s1, 128 }
 0x4af   :  { %p1707_p12 = scmp.ne.s32.totalorder %s1201_s1, %s1706_s28  ;;  %p1711_p13 = scmp.lt.s32.totalorder %s1201_s1, %s1201_s1 }
 0x4b0   :  { %p1712_p0 = scmp.lt.s32.totalorder %s1710_s30, %s1706_s28 }
 0x4b2   :  { %p1713_p1 = por %p1712_p0, %p1711_p13 }
 0x4b4   :  { %p1714_p2 = pnand %p1713_p1, %p1707_p12 }
 0x4b6   :  { %1717 = shalt.err (!%p1714_p2)
}
 0x4b7   :  { %s1718_s3 = scalar_lea.hbm %s1918_s8, 32 }
 0x4b8   :  { %p1719_p3 = scmp.ne.s32.totalorder %s1918_s8, %s1718_s3  ;;  %p1722_p4 = scmp.lt.u32.totalorder %s1718_s3, %s1918_s8 }
 0x4ba   :  { %p1724_p5 = pnand %p1722_p4, %p1719_p3 }
 0x4bc   :  { %1727 = shalt.err (!%p1724_p5)
}
 0x4bd   :  { %1206 = dma.vmem_to_hbm [thread:$0]  %s1201_s1, 32, %s1918_s8, [#allocation12], %s1752_s24, %s1752_s24, %s1753_s25  }
 0x4be   :  { %1734 = dma.done.wait [#allocation4], 128  }
 0x4bf   :  { %1735 = vsyncadd [#allocation4], 4294967168 }
 0x4c0   :  { %1736 = dma.done.wait [#allocation12], 128  }
 0x4c1   :  { %1737 = vsyncadd [#allocation12], 4294967168 }
 0x4c2   :  { %1213 = vsyncpa [#allocation3], 1 }
 0x4c3   :  { %1214 = vsyncpa [#allocation6], 1 }
 0x4c4   :  { %1215 = vsyncpa [#allocation9], 1 }
 0x4c5   :  { %1216 = vsyncpa [#allocation4], 1 }
 0x4c6   :  { %1217 = vsyncpa [#allocation12], 1 }

</bundles_post_ra>
